<compile_context>
chip_gen: v7x
topology: tpu7x:2x2x1
jax: 0.10.0
libtpu: 0.0.40
codegen_flags: <defaults>
</compile_context>

<pallas_src>
import math

import jax
import jax.numpy as jnp
from jax.experimental import pallas as pl
from jax.experimental.pallas import tpu as pltpu


# Large finite negative bias: exp(x - row_max) underflows to exactly 0.0 in
# f32, so masked keys get exactly zero weight (same as -inf masked_fill +
# softmax), while fully-masked rows stay finite instead of producing NaN.
_NEG_LARGE = -1e30


def _make_sdpa_kernel(scale: float, has_mask: bool):
    def kernel(*refs):
        if has_mask:
            q_ref, k_ref, v_ref, m_ref, out_ref, attn_ref = refs
        else:
            q_ref, k_ref, v_ref, out_ref, attn_ref = refs
            m_ref = None

        q = q_ref[0]  # (Ht, Sq_t, D)  native dtype
        k = k_ref[0]  # (Ht, Sk,   D)
        v = v_ref[0]  # (Ht, Sk,   D)

        # Scale Q before the matmul (Sq_t*D muls instead of Sq_t*Sk).
        q = q * jnp.asarray(scale, dtype=q.dtype)

        # QK^T: batched dot_general contracting the last dim of both operands
        # (no explicit transpose); f32 accumulation on the MXU.
        scores = jnp.einsum(
            "hqd,hkd->hqk", q, k, preferred_element_type=jnp.float32
        )  # (Ht, Sq_t, Sk) f32

        if m_ref is not None:
            m = m_ref[0]  # (Sm_t, Sk) int32; Sm_t is 1 (padding mask) or Sq_t
            scores = jnp.where((m != 0)[None, :, :], _NEG_LARGE, scores)

        # Numerically-stable softmax in f32.
        row_max = jnp.max(scores, axis=-1, keepdims=True)
        exps = jnp.exp(scores - row_max)
        denom = jnp.sum(exps, axis=-1, keepdims=True)
        # Exact reciprocal keeps the returned attention weights accurate;
        # switch to approx=True (EUP) if weight precision is not critical.
        weights = exps * pl.reciprocal(denom, approx=False)

        # Context = weights @ V (weights cast back to operand dtype for the
        # MXU; accumulate in f32).
        out = jnp.einsum(
            "hqk,hkd->hqd", weights.astype(v.dtype), v,
            preferred_element_type=jnp.float32,
        )

        out_ref[0] = out.astype(out_ref.dtype)
        attn_ref[0] = weights.astype(attn_ref.dtype)

    return kernel


def _pick_tile(dim, candidates=(512, 256, 128, 64, 32, 16, 8)):
    """Largest candidate that divides `dim`; else the full dim."""
    for c in candidates:
        if dim >= c and dim % c == 0:
            return c
    return dim


def scaled_dot_product_attention(query, key, value, mask=None):
    """query/key/value: [B, H, S, D]; mask: [B,1,1,Sk] or [B,1,Sk,Sk] (bool/int)
    or None.  Returns (output [B,H,Sq,D], attention_weights [B,H,Sq,Sk])."""
    B, H, Sq, D = query.shape
    Sk = key.shape[2]
    itemsize = jnp.dtype(query.dtype).itemsize

    block_q = _pick_tile(Sq)

    # Fuse as many heads per grid step as fit a ~16 MiB per-step VMEM budget
    # (f32 scores + weights-out block + double-buffered Q/K/V/O tiles).
    per_head = (
        3 * block_q * Sk * 4               # f32 scores + attn output block (dbl-buf)
        + 2 * 2 * Sk * D * itemsize        # K + V tiles, double buffered
        + 2 * 2 * block_q * D * itemsize   # Q + O tiles, double buffered
    )
    budget = 16 * 1024 * 1024
    block_h = max(1, min(H, budget // max(per_head, 1)))
    while H % block_h:
        block_h -= 1

    grid = (B, H // block_h, Sq // block_q)

    in_specs = [
        pl.BlockSpec((1, block_h, block_q, D), lambda b, h, qi: (b, h, qi, 0)),
        pl.BlockSpec((1, block_h, Sk, D), lambda b, h, qi: (b, h, 0, 0)),
        pl.BlockSpec((1, block_h, Sk, D), lambda b, h, qi: (b, h, 0, 0)),
    ]
    inputs = [query, key, value]

    has_mask = mask is not None
    if has_mask:
        Sm = mask.shape[-2]
        if Sm not in (1, Sq):
            raise ValueError(
                f"mask second-to-last dim must be 1 or {Sq}, got {Sm}"
            )
        # Compact mask: [B, Sm, Sk]; no dense [B, Sq, Sk] densification and
        # no per-head re-fetch (block index independent of the head axis).
        mask_c = mask.astype(jnp.int32).reshape(B, Sm, Sk)
        if Sm == 1:
            m_spec = pl.BlockSpec((1, 1, Sk), lambda b, h, qi: (b, 0, 0))
        else:
            m_spec = pl.BlockSpec((1, block_q, Sk), lambda b, h, qi: (b, qi, 0))
        in_specs.append(m_spec)
        inputs.append(mask_c)

    out_specs = [
        pl.BlockSpec((1, block_h, block_q, D), lambda b, h, qi: (b, h, qi, 0)),
        pl.BlockSpec((1, block_h, block_q, Sk), lambda b, h, qi: (b, h, qi, 0)),
    ]
    out_shape = (
        jax.ShapeDtypeStruct((B, H, Sq, D), query.dtype),
        jax.ShapeDtypeStruct((B, H, Sq, Sk), query.dtype),
    )

    kernel = _make_sdpa_kernel(1.0 / math.sqrt(D), has_mask)

    out, attn = pl.pallas_call(
        kernel,
        out_shape=out_shape,
        grid_spec=pltpu.PrefetchScalarGridSpec(
            num_scalar_prefetch=0,
            grid=grid,
            in_specs=in_specs,
            out_specs=out_specs,
        ),
        compiler_params=pltpu.CompilerParams(
            dimension_semantics=("parallel", "parallel", "parallel"),
            vmem_limit_bytes=48 * 1024 * 1024,
        ),
    )(*inputs)
    return out, attn


def _reference(query, key, value, mask):
    depth = key.shape[-1]
    scores = jnp.einsum(
        "bhqd,bhkd->bhqk", query, key, precision=jax.lax.Precision.HIGHEST
    ) / math.sqrt(depth)
    if mask is not None:
        scores = jnp.where(mask, -jnp.inf, scores)
    weights = jax.nn.softmax(scores, axis=-1)
    out = jnp.einsum(
        "bhqk,bhkd->bhqd", weights, value, precision=jax.lax.Precision.HIGHEST
    )
    return out, weights


if __name__ == "__main__":
    B, H, Sq, Sk, D = 2, 4, 8, 8, 32

    key0 = jax.random.PRNGKey(0)
    kq, kk, kv, km = jax.random.split(key0, 4)
    query = jax.random.normal(kq, (B, H, Sq, D), dtype=jnp.float32)
    key_t = jax.random.normal(kk, (B, H, Sk, D), dtype=jnp.float32)
    value = jax.random.normal(kv, (B, H, Sk, D), dtype=jnp.float32)
    # Padding-style mask [B, 1, 1, Sk]: mask the last 2 key positions of batch 1.
    mask = jnp.zeros((B, 1, 1, Sk), dtype=bool).at[1, 0, 0, -2:].set(True)

    # With mask.
    out, attn = scaled_dot_product_attention(query, key_t, value, mask)
    out = jax.block_until_ready(out)
    attn = jax.block_until_ready(attn)
    ref_out, ref_attn = _reference(query, key_t, value, mask)
    assert jnp.allclose(out, ref_out, atol=1e-5, rtol=1e-5)
    assert jnp.allclose(attn, ref_attn, atol=1e-5, rtol=1e-5)

    # Without mask.
    out2, attn2 = scaled_dot_product_attention(query, key_t, value, None)
    out2 = jax.block_until_ready(out2)
    attn2 = jax.block_until_ready(attn2)
    ref_out2, ref_attn2 = _reference(query, key_t, value, None)
    assert jnp.allclose(out2, ref_out2, atol=1e-5, rtol=1e-5)
    assert jnp.allclose(attn2, ref_attn2, atol=1e-5, rtol=1e-5)

    print("KERNEL_OK")
</pallas_src>

<mosaic_0001>
module attributes {stable_mosaic.version = 11 : i64} {
  func.func @kernel(%arg0: i32, %arg1: i32, %arg2: i32, %arg3: memref<1x4x8x32xf32, #tpu.memory_space<vmem>>, %arg4: memref<1x4x8x32xf32, #tpu.memory_space<vmem>>, %arg5: memref<1x4x8x32xf32, #tpu.memory_space<vmem>>, %arg6: memref<1x1x8xi32, #tpu.memory_space<vmem>>, %arg7: memref<1x4x8x32xf32, #tpu.memory_space<vmem>>, %arg8: memref<1x4x8x8xf32, #tpu.memory_space<vmem>>) attributes {dimension_semantics = [#tpu.dimension_semantics<parallel>, #tpu.dimension_semantics<parallel>, #tpu.dimension_semantics<parallel>], iteration_bounds = array<i64: 2, 1, 1>, scalar_prefetch = 0 : i64, scratch_operands = 0 : i64, tpu.core_type = #tpu.core_type<tc>, window_params = [{transform_indices = @transform_0, window_bounds = array<i64: 1, 4, 8, 32>}, {transform_indices = @transform_1, window_bounds = array<i64: 1, 4, 8, 32>}, {transform_indices = @transform_2, window_bounds = array<i64: 1, 4, 8, 32>}, {transform_indices = @transform_3, window_bounds = array<i64: 1, 1, 8>}, {transform_indices = @transform_4, window_bounds = array<i64: 1, 4, 8, 32>}, {transform_indices = @transform_5, window_bounds = array<i64: 1, 4, 8, 8>}]} {
    %c0 = arith.constant 0 : index
    %c0_0 = arith.constant 0 : index
    %c0_1 = arith.constant 0 : index
    %c0_2 = arith.constant 0 : index
    %0 = vector.load %arg3[%c0, %c0_0, %c0_1, %c0_2] : memref<1x4x8x32xf32, #tpu.memory_space<vmem>>, vector<1x4x8x32xf32>
    %1 = vector.shape_cast %0 : vector<1x4x8x32xf32> to vector<4x8x32xf32>
    %c0_3 = arith.constant 0 : index
    %c0_4 = arith.constant 0 : index
    %c0_5 = arith.constant 0 : index
    %c0_6 = arith.constant 0 : index
    %2 = vector.load %arg4[%c0_3, %c0_4, %c0_5, %c0_6] : memref<1x4x8x32xf32, #tpu.memory_space<vmem>>, vector<1x4x8x32xf32>
    %3 = vector.shape_cast %2 : vector<1x4x8x32xf32> to vector<4x8x32xf32>
    %c0_7 = arith.constant 0 : index
    %c0_8 = arith.constant 0 : index
    %c0_9 = arith.constant 0 : index
    %c0_10 = arith.constant 0 : index
    %4 = vector.load %arg5[%c0_7, %c0_8, %c0_9, %c0_10] : memref<1x4x8x32xf32, #tpu.memory_space<vmem>>, vector<1x4x8x32xf32>
    %5 = vector.shape_cast %4 : vector<1x4x8x32xf32> to vector<4x8x32xf32>
    %cst = arith.constant 0.176776692 : f32
    %6 = vector.broadcast %cst : f32 to vector<4x8x32xf32>
    %7 = arith.mulf %1, %6 : vector<4x8x32xf32>
    "tpu.trace_start"() <{level = 10 : i32, message = "hqd,hkd->hqk"}> : () -> ()
    %cst_11 = arith.constant dense<0.000000e+00> : vector<4x8x8xf32>
    %8 = tpu.matmul %7, %3, %cst_11 {dimension_numbers = #tpu.dot_dimension_numbers<[2], [2], [1], [1], [0, 0, 0, 1, 1, 1], [0], [0]>} : vector<4x8x32xf32>, vector<4x8x32xf32>, vector<4x8x8xf32> -> vector<4x8x8xf32>
    "tpu.trace_stop"() : () -> ()
    %c0_12 = arith.constant 0 : index
    %c0_13 = arith.constant 0 : index
    %c0_14 = arith.constant 0 : index
    %9 = vector.load %arg6[%c0_12, %c0_13, %c0_14] : memref<1x1x8xi32, #tpu.memory_space<vmem>>, vector<1x1x8xi32>
    %10 = vector.shape_cast %9 : vector<1x1x8xi32> to vector<1x8xi32>
    %c0_i32 = arith.constant 0 : i32
    %11 = vector.broadcast %c0_i32 : i32 to vector<1x8xi32>
    %12 = arith.cmpi ne, %10, %11 : vector<1x8xi32>
    %13 = vector.shape_cast %12 : vector<1x8xi1> to vector<1x1x8xi1>
    %cst_15 = arith.constant -1.000000e+30 : f32
    %14 = vector.shape_cast %13 : vector<1x1x8xi1> to vector<1x1x8xi1>
    %15 = vector.broadcast %14 : vector<1x1x8xi1> to vector<4x8x8xi1>
    %16 = vector.broadcast %cst_15 : f32 to vector<4x8x8xf32>
    %17 = arith.select %15, %16, %8 : vector<4x8x8xi1>, vector<4x8x8xf32>
    %cst_16 = arith.constant dense<0xFF800000> : vector<4x8xf32>
    %18 = vector.multi_reduction <maximumf>, %17, %cst_16 [2] : vector<4x8x8xf32> to vector<4x8xf32>
    %19 = vector.shape_cast %18 : vector<4x8xf32> to vector<4x8x1xf32>
    %20 = vector.broadcast %19 : vector<4x8x1xf32> to vector<4x8x8xf32>
    %21 = arith.subf %17, %20 : vector<4x8x8xf32>
    %22 = math.exp %21 : vector<4x8x8xf32>
    %cst_17 = arith.constant dense<0.000000e+00> : vector<4x8xf32>
    %23 = vector.multi_reduction <add>, %22, %cst_17 [2] : vector<4x8x8xf32> to vector<4x8xf32>
    %24 = vector.shape_cast %23 : vector<4x8xf32> to vector<4x8x1xf32>
    %25 = tpu.reciprocal %24 : vector<4x8x1xf32> -> vector<4x8x1xf32>
    %26 = vector.broadcast %25 : vector<4x8x1xf32> to vector<4x8x8xf32>
    %27 = arith.mulf %22, %26 : vector<4x8x8xf32>
    "tpu.trace_start"() <{level = 10 : i32, message = "hqk,hkd->hqd"}> : () -> ()
    %cst_18 = arith.constant dense<0.000000e+00> : vector<4x8x32xf32>
    %28 = tpu.matmul %27, %5, %cst_18 {dimension_numbers = #tpu.dot_dimension_numbers<[2], [1], [1], [2], [0, 0, 0, 1, 1, 2], [0], [0]>} : vector<4x8x8xf32>, vector<4x8x32xf32>, vector<4x8x32xf32> -> vector<4x8x32xf32>
    "tpu.trace_stop"() : () -> ()
    %c0_19 = arith.constant 0 : index
    %c0_20 = arith.constant 0 : index
    %c0_21 = arith.constant 0 : index
    %c0_22 = arith.constant 0 : index
    %29 = vector.load %arg7[%c0_19, %c0_20, %c0_21, %c0_22] : memref<1x4x8x32xf32, #tpu.memory_space<vmem>>, vector<1x4x8x32xf32>
    %30 = vector.shape_cast %29 : vector<1x4x8x32xf32> to vector<4x8x32xf32>
    %31 = vector.shape_cast %28 : vector<4x8x32xf32> to vector<1x4x8x32xf32>
    tpu.vector_store %arg7[%c0_19, %c0_20, %c0_21, %c0_22], %31 {strides = array<i32>} : memref<1x4x8x32xf32, #tpu.memory_space<vmem>>, vector<1x4x8x32xf32>,
    %c0_23 = arith.constant 0 : index
    %c0_24 = arith.constant 0 : index
    %c0_25 = arith.constant 0 : index
    %c0_26 = arith.constant 0 : index
    %32 = vector.load %arg8[%c0_23, %c0_24, %c0_25, %c0_26] : memref<1x4x8x8xf32, #tpu.memory_space<vmem>>, vector<1x4x8x8xf32>
    %33 = vector.shape_cast %32 : vector<1x4x8x8xf32> to vector<4x8x8xf32>
    %34 = vector.shape_cast %27 : vector<4x8x8xf32> to vector<1x4x8x8xf32>
    tpu.vector_store %arg8[%c0_23, %c0_24, %c0_25, %c0_26], %34 {strides = array<i32>} : memref<1x4x8x8xf32, #tpu.memory_space<vmem>>, vector<1x4x8x8xf32>,
    return
  }
  func.func @transform_0(%arg0: i32, %arg1: i32, %arg2: i32) -> (i32, i32, i32, i32) {
    %c0_i32 = arith.constant 0 : i32
    %c0_i32_0 = arith.constant 0 : i32
    return %arg0, %arg1, %arg2, %c0_i32 : i32, i32, i32, i32
  }
  func.func @transform_1(%arg0: i32, %arg1: i32, %arg2: i32) -> (i32, i32, i32, i32) {
    %c0_i32 = arith.constant 0 : i32
    %c0_i32_0 = arith.constant 0 : i32
    %c0_i32_1 = arith.constant 0 : i32
    return %arg0, %arg1, %c0_i32, %c0_i32_0 : i32, i32, i32, i32
  }
  func.func @transform_2(%arg0: i32, %arg1: i32, %arg2: i32) -> (i32, i32, i32, i32) {
    %c0_i32 = arith.constant 0 : i32
    %c0_i32_0 = arith.constant 0 : i32
    %c0_i32_1 = arith.constant 0 : i32
    return %arg0, %arg1, %c0_i32, %c0_i32_0 : i32, i32, i32, i32
  }
  func.func @transform_3(%arg0: i32, %arg1: i32, %arg2: i32) -> (i32, i32, i32) {
    %c0_i32 = arith.constant 0 : i32
    %c0_i32_0 = arith.constant 0 : i32
    %c0_i32_1 = arith.constant 0 : i32
    return %arg0, %c0_i32, %c0_i32_0 : i32, i32, i32
  }
  func.func @transform_4(%arg0: i32, %arg1: i32, %arg2: i32) -> (i32, i32, i32, i32) {
    %c0_i32 = arith.constant 0 : i32
    %c0_i32_0 = arith.constant 0 : i32
    return %arg0, %arg1, %arg2, %c0_i32 : i32, i32, i32, i32
  }
  func.func @transform_5(%arg0: i32, %arg1: i32, %arg2: i32) -> (i32, i32, i32, i32) {
    %c0_i32 = arith.constant 0 : i32
    %c0_i32_0 = arith.constant 0 : i32
    return %arg0, %arg1, %arg2, %c0_i32 : i32, i32, i32, i32
  }
}

</mosaic_0001>

<bundles_post_ra>
// kernel: tpu_custom_call.1
= control target key start
LH: loop header
LB: loop body
LE: loop exit
PB: predicated region body
PF: predicated region fallthrough
CT: control target
= control target key end

     0   :  { %s2136_s0 = inlined_call_operand.hbm [shape: f32[2,4,8,32], index: 0, kind: input, shape index: {}]   ;;  %s2137_s1 = inlined_call_operand.hbm [shape: f32[2,4,8,32], index: 1, kind: input, shape index: {}]   ;;  %s2138_s2 = inlined_call_operand.hbm [shape: f32[2,4,8,32], index: 2, kind: input, shape index: {}]   ;;  %s2139_s3 = inlined_call_operand.vmem [shape: s32[2,1,8], index: 3, kind: input, shape index: {}]   ;;  %s2140_s4 = inlined_call_operand.hbm [shape: f32[2,4,8,32], index: 4, kind: output, shape index: {0}]   ;;  %s2141_s5 = inlined_call_operand.hbm [shape: f32[2,4,8,8], index: 5, kind: output, shape index: {1}]  }
   0x1   :  { %2154 = sst [smem:[#allocation20_spill]] %s2137_s1 }
   0x2   :  { %11 = vsyncpa [#allocation3], 0 }
   0x3   :  { %13 = vsyncpa [#allocation3 + $0x1], 0 }
   0x4   :  { %14 = vsyncpa [#allocation6], 0 }
   0x5   :  { %16 = vsyncpa [#allocation6 + $0x1], 0 }
   0x6   :  { %17 = vsyncpa [#allocation4], 0 }
   0x7   :  { %19 = vsyncpa [#allocation4 + $0x1], 0 }
   0x8   :  { %20 = vsyncpa [#allocation10], 0 }
   0x9   :  { %22 = vsyncpa [#allocation10 + $0x1], 0  ;;  %s1749_s18 = smov 0   ;;  %s1751_s19 = smov 0  }
   0xa   :  { %s1753_s20 = smov 0   ;;  %s1755_s21 = smov 0  }
   0xb   :  { %s1757_s22 = smov 0   ;;  %s1759_s23 = smov 0  }
   0xc LB: > { %2155 = sst [smem:[#allocation15_spill]] %s1701_s22  ;;  %s1780_s24 = sadd.s32 4294967295, %s1705_s23   ;;  %s1705_s23 = sphi %s1759_s23, %s28_s23   ;;  %s1701_s22 = sphi %s1757_s22, %s2182_s22   ;;  %s1697_s21 = sphi %s1755_s21, %s2181_s21   ;;  %s1693_s20 = sphi %s1753_s20, %s2185_s20   ;;  %s1689_s19 = sphi %s1751_s19, %s2184_s19   ;;  %s1685_s18 = sphi %s1749_s18, %s2183_s18  }
   0xd   : > { %2156 = sst [smem:[#allocation16_spill]] %s1705_s23  ;;  %s1298_s25 = sadd.s32 4294967294, %s1705_s23  }
   0xe   : > { %s47_s26 = sadd.s32 1, %s1701_s22  ;;  %s58_s27 = sadd.s32 1, %s1693_s20 }
   0xf   : > { %p49_p0 = scmp.ge.s32.totalorder %s47_s26, 2  ;;  %p65_p1 = scmp.ne.s32.totalorder %s1693_s20, %s1689_s19 }
  0x10   : > { %p66_p2 = scmp.eq.s32.totalorder %s1705_s23, 0  ;;  %p71_p3 = scmp.ne.s32.totalorder %s1689_s19, %s1685_s18 }
  0x11   : > { %s2187_s26 = smov (%p49_p0, %s47_s26), 0  ;;  %p72_p5 = scmp.eq.s32.totalorder %s1780_s24, 0 }
  0x12   : > { %2157 = sst [smem:[#allocation17_spill]] %s2187_s26  ;;  %p1792_p4 = por %p66_p2, %p65_p1 }
  0x13   : > { %s51_s29 = ssub.s32 %s1701_s22, %s2187_s26  ;;  %p181_p6 = scmp.eq.s32.totalorder %s1780_s24, 1 }
  0x14   : > { %p56_p7 = scmp.eq.s32.totalorder %s51_s29, 0  ;;  %p1800_p8 = por %p72_p5, %p71_p3 }
  0x15   : > { %p1804_p9 = por %p181_p6, %p65_p1  ;;  %p187_p10 = scmp.eq.s32.totalorder %s1298_s25, 1 }
  0x16   : > { %s2159_s30 = scalar_select %p1800_p8, 1, 0 }
  0x17   : > { %s2160_s6 = scalar_select %p1804_p9, 1, 0 }
  0x18   : > { %s1809_s7 = scalar_select %p56_p7, %s1693_s20, %s58_s27  }
  0x19   : > { %p1811_p11 = por %p187_p10, %p71_p3  ;;  %p1424_p13 = scmp.lt.s32.totalorder %s1705_s23, 2 }
  0x1a   : > { %2161 = sst [smem:[#allocation18_spill]] %s1809_s7  ;;  %s2142_s9 = sand.u32 1, %s1693_s20  }
  0x1b   : > { %s2162_s8 = scalar_select %p1811_p11, 1, 0 }
  0x1c   : > { %s1820_s10 = sshll.u32 %s2142_s9, 5  ;;  %s1823_s11 = sshll.u32 %s1701_s22, 9 }
  0x1d   : > { %2163 = sst [smem:[#allocation19_spill]] %s2162_s8  ;;  %p1827_p0 = pnand %p1424_p13, %p1792_p4 }
  0x1e   : > { %s261_s13 = sand.u32 1, %s1705_s23   ;;  %s2165_s1 = sld [smem:[#allocation20_spill]] }
  0x1f   : > { %s265_s17 = scalar_lea.vmem [#allocation5], %s1820_s10  ;;  %s1843_s27 = scalar_lea.sflag [#allocation6], %s261_s13 }
  0x20   : > { %s274_s25 = sshll.u32 %s265_s17, 4  ;;  %p1849_p4 = pneg %p1827_p0  ;;  %s1840_s25 = int_to_ptr.vmem [resolvable:$true] %s274_s25 }
  0x24   : > { %s1836_s16 = scalar_lea.hbm %s2165_s1, %s1823_s11  ;;  %s1502_s17 = scalar_lea.hbm %s2165_s1, 1024 }
  0x25   : > { %s1497_s28 = scalar_lea.hbm %s1836_s16, 512  ;;  %p1503_p7 = scmp.lt.u32.totalorder %s1836_s16, %s2165_s1 }
  0x26   : > { %p1498_p3 = scmp.ne.s32.totalorder %s1836_s16, %s1497_s28  ;;  %p1504_p10 = scmp.lt.u32.totalorder %s1502_s17, %s1497_s28 }
  0x27   : > { %p1506_p12 = scmp.lt.u32.totalorder %s1497_s28, %s1836_s16 }
  0x28   : > { %p1500_p5 = pnand %p1849_p4, %p1498_p3  ;;  %p1505_p13 = por %p1504_p10, %p1503_p7 }
  0x2a   : > { %p1501_p6 = pneg %p1500_p5  ;;  %p1507_p1 = por %p1506_p12, %p1505_p13 }
  0x2c   : > { %p1508_p2 = pnand %p1507_p1, %p1501_p6 }
  0x2e   : > { %1511 = shalt.err (!%p1508_p2)
}
  0x2f   : > { %s1512_s13 = scalar_lea.vmem %s1840_s25, 512  ;;  %s1707_s14 = smov [#allocation5]  }
  0x30   : > { %p1513_p3 = scmp.ne.s32.totalorder %s1840_s25, %s1512_s13  ;;  %s1517_s15 = sshll.u32 %s1707_s14, 4  ;;  %s1518_s15 = int_to_ptr.vmem [resolvable:$false] %s1517_s15 }
  0x31   : > { %s1519_s26 = scalar_lea.vmem %s1518_s15, 1024  ;;  %p1520_p9 = scmp.lt.s32.totalorder %s1840_s25, %s1518_s15 }
  0x32   : > { %p1515_p5 = pnand %p1513_p3, %p1849_p4  ;;  %p1521_p8 = scmp.lt.s32.totalorder %s1519_s26, %s1512_s13 }
  0x34   : > { %p1516_p11 = pneg %p1515_p5  ;;  %p1522_p7 = por %p1521_p8, %p1520_p9 }
  0x36   : > { %p1523_p10 = pnand %p1522_p7, %p1516_p11 }
  0x38   : > { %1526 = shalt.err (!%p1523_p10)
}
  0x39   : > { %s2146_s9 = smov 128   ;;  %s2148_s28 = smov 8  }
  0x3a   : > { %1413 = dma.hbm_to_vmem [thread:$0]  (!%p1827_p0), %s1836_s16, 512, %s1840_s25, %s1843_s27, %s2146_s9, %s2146_s9, %s2148_s28  }
  0x3b   : > { %p2167_p8 = scmp.lt.s32.totalorder %s1705_s23, 3  ;;  %p2168_p9 = scmp.ge.s32.totalorder %s1705_s23, 1 }
  0x3c   : > { %s1888_s15 = scalar_lea.hbm %s2136_s0, %s1823_s11  ;;  %s241_s26 = scalar_lea.vmem [#allocation2], %s1820_s10 }
  0x3d   : > { %p1880_p11 = pnand %p2168_p9, %p2167_p8  ;;  %s251_s1 = sshll.u32 %s241_s26, 4  ;;  %s1891_s1 = int_to_ptr.vmem [resolvable:$true] %s251_s1 }
  0x3e   : > { %s1897_s9 = scalar_lea.hbm %s2138_s2, %s1823_s11  ;;  %s2170_s28 = sand.u32 1, %s1693_s20  }
  0x3f   : > { %s2169_s17 = scalar_select %p1880_p11, 1, 0 }
  0x40   : > { %s1901_s22 = scalar_lea.sflag [#allocation3], %s2170_s28  ;;  %s1527_s7 = scalar_lea.hbm %s1888_s15, 512 }
  0x41   : > { %p1528_p12 = scmp.ne.s32.totalorder %s1888_s15, %s1527_s7  ;;  %s1532_s23 = scalar_lea.hbm %s2136_s0, 1024 }
  0x42   : > { %p1533_p6 = scmp.lt.u32.totalorder %s1888_s15, %s2136_s0  ;;  %p1534_p13 = scmp.lt.u32.totalorder %s1532_s23, %s1527_s7 }
  0x43   : > { %p1530_p1 = pnand %p1528_p12, %p1849_p4  ;;  %p1536_p5 = scmp.lt.u32.totalorder %s1527_s7, %s1888_s15 }
  0x44   : > { %p1535_p3 = por %p1534_p13, %p1533_p6 }
  0x45   : > { %p1531_p2 = pneg %p1530_p1 }
  0x46   : > { %p1537_p7 = por %p1536_p5, %p1535_p3 }
  0x48   : > { %p1538_p10 = pnand %p1537_p7, %p1531_p2 }
  0x4a   : > { %1541 = shalt.err (!%p1538_p10)
}
  0x4b   : > { %s1542_s11 = scalar_lea.vmem %s1891_s1, 512  ;;  %s1710_s28 = smov [#allocation2]  }
  0x4c   : > { %p1543_p8 = scmp.ne.s32.totalorder %s1891_s1, %s1542_s11  ;;  %s1547_s16 = sshll.u32 %s1710_s28, 4  ;;  %s1548_s16 = int_to_ptr.vmem [resolvable:$false] %s1547_s16 }
  0x4d   : > { %s1549_s8 = scalar_lea.vmem %s1548_s16, 1024  ;;  %p1550_p1 = scmp.lt.s32.totalorder %s1891_s1, %s1548_s16 }
  0x4e   : > { %p1545_p9 = pnand %p1543_p8, %p1849_p4  ;;  %p1551_p11 = scmp.lt.s32.totalorder %s1549_s8, %s1542_s11 }
  0x50   : > { %p1546_p12 = pneg %p1545_p9  ;;  %p1552_p6 = por %p1551_p11, %p1550_p1 }
  0x52   : > { %p1553_p13 = pnand %p1552_p6, %p1546_p12 }
  0x54   : > { %1556 = shalt.err (!%p1553_p13)
}
  0x55   : > { %s2171_s23 = smov 8   ;;  %s2172_s7 = smov 128  }
  0x56   : > { %1410 = dma.hbm_to_vmem [thread:$0]  (!%p1827_p0), %s1888_s15, 512, %s1891_s1, %s1901_s22, %s2172_s7, %s2172_s7, %s2171_s23  }
  0x57   : > { %s288_s25 = scalar_lea.vmem [#allocation7], %s1820_s10  ;;  %s1557_s14 = scalar_lea.hbm %s1897_s9, 512 }
  0x58   : > { %s297_s13 = sshll.u32 %s288_s25, 4  ;;  %p1558_p11 = scmp.ne.s32.totalorder %s1897_s9, %s1557_s14  ;;  %s1929_s13 = int_to_ptr.vmem [resolvable:$true] %s297_s13 }
  0x59   : > { %s1562_s28 = scalar_lea.hbm %s2138_s2, 1024  ;;  %p1563_p5 = scmp.lt.u32.totalorder %s1897_s9, %s2138_s2 }
  0x5a   : > { %p1560_p2 = pnand %p1558_p11, %p1849_p4  ;;  %p1564_p7 = scmp.lt.u32.totalorder %s1562_s28, %s1557_s14 }
  0x5b   : > { %p1566_p8 = scmp.lt.u32.totalorder %s1557_s14, %s1897_s9 }
  0x5c   : > { %p1561_p3 = pneg %p1560_p2  ;;  %p1565_p10 = por %p1564_p7, %p1563_p5 }
  0x5e   : > { %p1567_p9 = por %p1566_p8, %p1565_p10 }
  0x60   : > { %p1568_p12 = pnand %p1567_p9, %p1561_p3 }
  0x62   : > { %1571 = shalt.err (!%p1568_p12)
}
  0x63   : > { %s1572_s1 = scalar_lea.vmem %s1929_s13, 512  ;;  %s1711_s22 = smov [#allocation7]  }
  0x64   : > { %p1573_p1 = scmp.ne.s32.totalorder %s1929_s13, %s1572_s1  ;;  %s1577_s10 = sshll.u32 %s1711_s22, 4  ;;  %s1578_s10 = int_to_ptr.vmem [resolvable:$false] %s1577_s10 }
  0x65   : > { %s1579_s15 = scalar_lea.vmem %s1578_s10, 1024  ;;  %p1580_p11 = scmp.lt.s32.totalorder %s1929_s13, %s1578_s10 }
  0x66   : > { %p1575_p6 = pnand %p1573_p1, %p1849_p4  ;;  %p1581_p2 = scmp.lt.s32.totalorder %s1579_s15, %s1572_s1 }
  0x68   : > { %p1576_p13 = pneg %p1575_p6  ;;  %p1582_p5 = por %p1581_p2, %p1580_p11 }
  0x6a   : > { %p1583_p7 = pnand %p1582_p5, %p1576_p13 }
  0x6c   : > { %1586 = shalt.err (!%p1583_p7)
}
  0x6d   : > { %1416 = dma.hbm_to_vmem [thread:$0]  (!%p1827_p0), %s1897_s9, 512, %s1929_s13, %s1843_s27, %s2172_s7, %s2172_s7, %s2171_s23  }
  0x6e   : > { %p2173_p4 = scmp.ne.s32.totalorder %s2169_s17, 0 }
  0x6f   : > { %s1959_s29 = sand.u32 (!%p2173_p4), 1, %s1689_s19   ;;  %p2174_p3 = scmp.ne.s32.totalorder (!%p2173_p4), %s2159_s30, 0 }
  0x70   : > { %315 = sbr.rel (%p2173_p4) target bundleno = 890 (0x37a), region = 36  ;;  %s1962_s25 = sshll.u32 (!%p2173_p4), %s1959_s29, 5 }
  0x71   : > { %s318_s12 = scalar_lea.sflag (!%p2173_p4), [#allocation3], %s1959_s29  ;;  %s321_s14 = scalar_lea.vmem (!%p2173_p4), [#allocation2], %s1962_s25 }
  0x77   : > { %1668 = dma.done.wait (%p2174_p3), %s318_s12, 512  }
  0x78   : > { %1670 = vsyncadd (%p2174_p3), %s318_s12, 4294966784  ;;  %s326_s27 = sand.u32 1, %s1780_s24   ;;  %s330_s17 = scalar_lea.vmem [#allocation5], %s1962_s25 }
  0x79   : > { %s327_s9 = scalar_lea.sflag [#allocation6], %s326_s27 }
  0x7a   : > { %1672 = dma.done.wait (%p2174_p3), %s327_s9, 1024  }
  0x7b   : > { %1674 = vsyncadd (%p2174_p3), %s327_s9, 4294966272  ;;  %v1712_v0 = vmov 0.0   ;;  %vm1713_vm0 = vmmov 0   ;;  %vm408_vm1 = vcmask 261120   ;;  %v396_v1 = vld [vmem:[%s330_s17] sm:$0xff]  ;;  %v397_v3 = vld [vmem:[%s330_s17 + $0x8] sm:$0xff]  ;;  %v716_v13 = vlaneseq }
  0x7c   : > { %1357 = vmatprep.subr.mxu0 %v1712_v0  ;;  %1359 = vmatprep.mubr.msk.f32.mxu0 %vm1713_vm0, %v1712_v0  ;;  %v392_v2 = vld [vmem:[%s321_s14] sm:$0xff]  ;;  %v393_v5 = vld [vmem:[%s321_s14 + $0x8] sm:$0xff]  ;;  %v394_v6 = vld [vmem:[%s321_s14 + $0x10] sm:$0xff]  ;;  %p387_p0 = scmp.lt.s32.totalorder %s1697_s21, 1  ;;  %v1714_v17 = vmov 0   ;;  %vm725_vm4 = vcmask 64512  }
  0x7d   : > { %1362 = vmatprep.subr.mxu1 %v1712_v0  ;;  %1364 = vmatprep.mubr.msk.f32.mxu1 %vm1713_vm0, %v1712_v0  ;;  %v404_v4 = vmul.f32 0.17677669, %v392_v2  ;;  %v398_v7 = vld [vmem:[%s330_s17 + $0x10] sm:$0xff]  ;;  %v405_v8 = vmul.f32 0.17677669, %v393_v5  ;;  %v395_v9 = vld [vmem:[%s321_s14 + $0x18] sm:$0xff] }
  0x7e   : > { %1358 = vmatpush3.xpose.msk.msra.mxu0 %vm408_vm1, %v396_v1  ;;  %1363 = vmatpush3.xpose.msk.msra.mxu1 %vm408_vm1, %v397_v3  ;;  %v399_v10 = vld [vmem:[%s330_s17 + $0x18] sm:$0xff]  ;;  %v406_v11 = vmul.f32 0.17677669, %v394_v6  ;;  %v407_v12 = vmul.f32 0.17677669, %v395_v9  ;;  %s388_s24 = scalar_select %p387_p0, %s1697_s21, 1 }
  0x7f   : > { %1367 = vmatprep.subr.mxu0 %v1712_v0  ;;  %1372 = vmatprep.subr.mxu1 %v1712_v0  ;;  %v717_v15 = vshrl.u32 %v716_v13, 7  ;;  %s339_s13 = scalar_lea.vmem [#allocation7], %s1962_s25  ;;  %s383_s26 = scalar_lea.vmem [#allocation9], %s1962_s25 }
  0x80   : > { %s389_s7 = scalar_lea.vmem %s2139_s3, %s388_s24  ;;  %v400_v56 = vld [vmem:[%s339_s13] sm:$0xff]  ;;  %v401_v57 = vld [vmem:[%s339_s13 + $0x8] sm:$0xff]  ;;  %v402_v1 = vld [vmem:[%s339_s13 + $0x10] sm:$0xff]  ;;  %s1339_s11 = sshll.u32 %s1697_s21, 9 }
  0x81   : > { %1360 = vmatmul.mubr.msk.f32.vlgmr.msra.gmra.mrb[0].mxu0 %vm408_vm1, %v404_v4  ;;  %1365 = vmatmul.mubr.msk.f32.vlgmr.msra.gmra.mrb[0].mxu1 %vm408_vm1, %v405_v8  ;;  %v713_v14 = vld [vmem:[%s389_s7] sm:$0x1]  ;;  %v718_v16 = vsub.s32 0, %v717_v15  ;;  %v403_v5 = vld [vmem:[%s339_s13 + $0x18] sm:$0xff]  ;;  %s2041_s8 = scalar_lea.hbm %s2141_s5, %s1339_s11  ;;  %s1111_s1 = sshll.u32 %s383_s26, 4  ;;  %s2043_s1 = int_to_ptr.vmem [resolvable:$true] %s1111_s1 }
  0x82   : > { %1368 = vmatpush3.xpose.msk.msra.mxu0 %vm408_vm1, %v398_v7  ;;  %1369 = vmatprep.mubr.msk.f32.mxu0 %vm1713_vm0, %v1712_v0  ;;  %vm714_vm2 = vcmp.ne.s32.totalorder %v713_v14, 0  ;;  %s1076_s22 = scalar_lea.sflag [#allocation10], %s1959_s29  ;;  %s1587_s10 = scalar_lea.vmem %s2043_s1, 512 }
  0x83   : > { %1373 = vmatpush3.xpose.msk.msra.mxu1 %vm408_vm1, %v399_v10  ;;  %1374 = vmatprep.mubr.msk.f32.mxu1 %vm1713_vm0, %v1712_v0  ;;  %v715_v18 = vsel %vm714_vm2, 1, %v1714_v17  ;;  %p1588_p10 = scmp.ne.s32.totalorder %s2043_s1, %s1587_s10  ;;  %p2175_p8 = scmp.ne.s32.totalorder %s2160_s6, 0 }
  0x84   : > { %1377 = vmatprep.subr.mxu0 %v1712_v0  ;;  %1382 = vmatprep.subr.mxu1 %v1712_v0  ;;  %v719_v19 = vrot.slane %v715_v18, %v718_v16  ;;  %s1715_s15 = smov [#allocation9]  }
  0x85   : > { %1370 = vmatmul.mubr.msk.f32.vlgmr.msra.gmra.mrb[2].mxu0 %vm408_vm1, %v406_v11  ;;  %p1589_p9 = pnand %p1588_p10, %p2175_p8  ;;  %s1591_s12 = sshll.u32 %s1715_s15, 4  ;;  %s1592_s12 = int_to_ptr.vmem [resolvable:$false] %s1591_s12 }
  0x86   : > { %1375 = vmatmul.mubr.msk.f32.vlgmr.msra.gmra.mrb[2].mxu1 %vm408_vm1, %v407_v12  ;;  %1379 = vmatprep.mubr.msk.f32.mxu0 %vm1713_vm0, %v1712_v0  ;;  %vm720_vm3 = vcmp.eq.s32.totalorder %v719_v19, 1  ;;  %s1593_s14 = scalar_lea.vmem %s1592_s12, 1024  ;;  %p1594_p1 = scmp.lt.s32.totalorder %s2043_s1, %s1592_s12 }
  0x87   : > { %1384 = vmatprep.mubr.msk.f32.mxu1 %vm1713_vm0, %v1712_v0  ;;  %1378 = vmatpush3.msra.mxu0 %v400_v56  ;;  %p1590_p12 = pneg %p1589_p9  ;;  %p1595_p6 = scmp.lt.s32.totalorder %s1593_s14, %s1587_s10 }
  0x88   : > { %1387 = vmatprep.subr.mxu0 %v1712_v0  ;;  %1383 = vmatpush3.msra.mxu1 %v401_v57 }
  0x89   : > { %1392 = vmatprep.subr.mxu1 %v1712_v0  ;;  %p1596_p13 = por %p1595_p6, %p1594_p1 }
  0x8b   : > { %p1597_p11 = pnand %p1596_p13, %p1590_p12 }
 0x154   : > { %v481_v20 = vpop.f32.mrb[0].mxu0  ;;  %v557_v21 = vpop.f32.mrb[0].mxu1 }
 0x155   : > { %v721_v22 = vsel %vm720_vm3, -1e+30, %v481_v20  ;;  %v1361_v23 = vpop.f32.mrb[1].mxu0  ;;  %v722_v24 = vsel %vm720_vm3, -1e+30, %v557_v21  ;;  %v1366_v25 = vpop.f32.mrb[1].mxu1 }
 0x156   : > { %v726_v26 = vsel %vm725_vm4, %v721_v22, -inf  ;;  %v729_v28 = vsel %vm725_vm4, %v722_v24, -inf }
 0x157   : > { %727 = vmax.xlane.f32.xlu0 %v726_v26 }
 0x158   : > { %v633_v27 = vpop.f32.mrb[2].mxu0 }
 0x159   : > { %v723_v29 = vsel %vm720_vm3, -1e+30, %v633_v27  ;;  %v1371_v30 = vpop.f32.mrb[3].mxu0  ;;  %v709_v31 = vpop.f32.mrb[2].mxu1 }
 0x15a   : > { %v732_v32 = vsel %vm725_vm4, %v723_v29, -inf  ;;  %v724_v33 = vsel %vm720_vm3, -1e+30, %v709_v31  ;;  %v1376_v34 = vpop.f32.mrb[3].mxu1 }
 0x15b   : > { %730 = vmax.xlane.f32.xlu0 %v729_v28  ;;  %733 = vmax.xlane.f32.xlu1 %v732_v32  ;;  %v735_v35 = vsel %vm725_vm4, %v724_v33, -inf }
 0x15f   : > { %736 = vmax.xlane.f32.xlu1 %v735_v35 }
 0x1e4   : > { %v728_v36 = vpop.xlane.xlu0 %727 }
 0x1e5   : > { %v738_v37 = vsub.f32 %v721_v22, %v728_v36 }
 0x1e7   : > { %v742_v38 = vmul.f32 1.442695, %v738_v37 }
 0x1e8   : > { %v731_v39 = vpop.xlane.xlu0 %730  ;;  %v734_v40 = vpop.xlane.xlu1 %733 }
 0x1e9   : > { %1481 = vpow2.f32 %v742_v38  ;;  %v739_v41 = vsub.f32 %v722_v24, %v731_v39  ;;  %v740_v42 = vsub.f32 %v723_v29, %v734_v40 }
 0x1eb   : > { %v744_v43 = vmul.f32 1.442695, %v739_v41  ;;  %v746_v44 = vmul.f32 1.442695, %v740_v42 }
 0x1ec   : > { %v737_v45 = vpop.xlane.xlu1 %736 }
 0x1ed   : > { %1483 = vpow2.f32 %v744_v43  ;;  %v741_v46 = vsub.f32 %v724_v33, %v737_v45 }
 0x1ee   : > { %1485 = vpow2.f32 %v746_v44 }
 0x1ef   : > { %v748_v47 = vmul.f32 1.442695, %v741_v46 }
 0x1f1   : > { %1487 = vpow2.f32 %v748_v47 }
 0x1f3   : > { %v1482_v48 = vpop.eup %1481 }
 0x1f4   : > { %v750_v49 = vsel %vm725_vm4, %v1482_v48, 0.0 }
 0x1f5   : > { %751 = vadd.xlane.f32.xlu0 %v750_v49 }
 0x1f7   : > { %v1484_v50 = vpop.eup %1483 }
 0x1f8   : > { %v1486_v51 = vpop.eup %1485  ;;  %v753_v52 = vsel %vm725_vm4, %v1484_v50, 0.0 }
 0x1f9   : > { %754 = vadd.xlane.f32.xlu1 %v753_v52  ;;  %v756_v53 = vsel %vm725_vm4, %v1486_v51, 0.0 }
 0x1fa   : > { %757 = vadd.xlane.f32.xlu0 %v756_v53 }
 0x1fb   : > { %v1488_v54 = vpop.eup %1487 }
 0x1fc   : > { %v759_v55 = vsel %vm725_vm4, %v1488_v54, 0.0 }
 0x1fd   : > { %760 = vadd.xlane.f32.xlu1 %v759_v55 }
 0x282   : > { %v752_v58 = vpop.xlane.xlu0 %751 }
 0x283   : > { %1489 = vrcp.f32 %v752_v58 }
 0x286   : > { %v755_v59 = vpop.xlane.xlu1 %754 }
 0x287   : > { %v758_v60 = vpop.xlane.xlu0 %757  ;;  %1491 = vrcp.f32 %v755_v59 }
 0x288   : > { %1493 = vrcp.f32 %v758_v60 }
 0x28a   : > { %v761_v61 = vpop.xlane.xlu1 %760 }
 0x28b   : > { %1495 = vrcp.f32 %v761_v61 }
 0x28d   : > { %v1490_v62 = vpop.eup %1489 }
 0x28e   : > { %v766_v63 = vmul.f32 %v1490_v62, %v1482_v48 }
 0x290   : > { %1066 = vst.msk [vmem:[%s383_s26] sm:$0xff] %vm725_vm4, %v766_v63  ;;  %1380 = vmatmul.mubr.msk.f32.vlgmr.msra.gmra.mrb[4].mxu0 %vm725_vm4, %v766_v63 }
 0x291   : > { %v1492_v2 = vpop.eup %1491  ;;  %1388 = vmatpush3.msra.mxu0 %v402_v1  ;;  %1389 = vmatprep.mubr.msk.f32.mxu0 %vm1713_vm0, %v1712_v0 }
 0x292   : > { %v1494_v3 = vpop.eup %1493  ;;  %v767_v4 = vmul.f32 %v1492_v2, %v1484_v50 }
 0x293   : > { %v768_v6 = vmul.f32 %v1494_v3, %v1486_v51 }
 0x294   : > { %1067 = vst.msk [vmem:[%s383_s26 + $0x8] sm:$0xff] %vm725_vm4, %v767_v4  ;;  %1385 = vmatmul.mubr.msk.f32.vlgmr.msra.gmra.mrb[4].mxu1 %vm725_vm4, %v767_v4 }
 0x295   : > { %v1496_v7 = vpop.eup %1495  ;;  %1068 = vst.msk [vmem:[%s383_s26 + $0x10] sm:$0xff] %vm725_vm4, %v768_v6  ;;  %1390 = vmatmul.mubr.msk.f32.vlgmr.msra.gmra.mrb[6].mxu0 %vm725_vm4, %v768_v6  ;;  %1393 = vmatpush3.msra.mxu1 %v403_v5 }
 0x296   : > { %v769_v8 = vmul.f32 %v1496_v7, %v1488_v54  ;;  %1394 = vmatprep.mubr.msk.f32.mxu1 %vm1713_vm0, %v1712_v0 }
 0x298   : > { %1069 = vst.msk [vmem:[%s383_s26 + $0x18] sm:$0xff] %vm725_vm4, %v769_v8  ;;  %1395 = vmatmul.mubr.msk.f32.vlgmr.msra.gmra.mrb[6].mxu1 %vm725_vm4, %v769_v8 }
 0x299   : > { %1600 = shalt.err (!%p1597_p11)
}
 0x29a   : > { %s1601_s27 = scalar_lea.hbm %s2041_s8, 512  ;;  %s1605_s24 = scalar_lea.hbm %s2141_s5, 1024 }
 0x29b   : > { %p1602_p2 = scmp.ne.s32.totalorder %s2041_s8, %s1601_s27  ;;  %p1606_p4 = scmp.lt.u32.totalorder %s2041_s8, %s2141_s5 }
 0x29c   : > { %p1607_p3 = scmp.lt.u32.totalorder %s1605_s24, %s1601_s27  ;;  %p1609_p10 = scmp.lt.u32.totalorder %s1601_s27, %s2041_s8 }
 0x29d   : > { %p1603_p5 = pnand %p1602_p2, %p2175_p8 }
 0x29e   : > { %p1608_p0 = por %p1607_p3, %p1606_p4 }
 0x29f   : > { %p1604_p7 = pneg %p1603_p5 }
 0x2a0   : > { %p1610_p9 = por %p1609_p10, %p1608_p0 }
 0x2a2   : > { %p1611_p12 = pnand %p1610_p9, %p1604_p7 }
 0x2a4   : > { %1614 = shalt.err (!%p1611_p12)
}
 0x2a5   : > { %s1716_s7 = smov 128   ;;  %s1717_s13 = smov 8  }
 0x2a6   : > { %1404 = dma.vmem_to_hbm [thread:$0]  (%p2175_p8), %s2043_s1, 512, %s2041_s8, %s1076_s22, %s1716_s7, %s1716_s7, %s1717_s13  }
 0x2a7   : > { %s376_s26 = scalar_lea.vmem [#allocation8], %s1962_s25  ;;  %s2083_s8 = scalar_lea.hbm %s2140_s4, %s1339_s11 }
 0x2a8   : > { %s1092_s28 = sshll.u32 %s376_s26, 4  ;;  %s1071_s1 = scalar_lea.sflag [#allocation4], %s1959_s29  ;;  %s2075_s28 = int_to_ptr.vmem [resolvable:$true] %s1092_s28 }
 0x2a9   : > { %s1615_s22 = scalar_lea.vmem %s2075_s28, 512  ;;  %s1718_s10 = smov [#allocation8]  }
 0x2aa   : > { %p1616_p1 = scmp.ne.s32.totalorder %s2075_s28, %s1615_s22  ;;  %s1619_s15 = sshll.u32 %s1718_s10, 4  ;;  %s1620_s15 = int_to_ptr.vmem [resolvable:$false] %s1619_s15 }
 0x2ab   : > { %s1621_s12 = scalar_lea.vmem %s1620_s15, 1024  ;;  %p1622_p11 = scmp.lt.s32.totalorder %s2075_s28, %s1620_s15 }
 0x2ac   : > { %p1617_p6 = pnand %p1616_p1, %p2175_p8  ;;  %p1623_p2 = scmp.lt.s32.totalorder %s1621_s12, %s1615_s22 }
 0x2ae   : > { %p1618_p13 = pneg %p1617_p6  ;;  %p1624_p5 = por %p1623_p2, %p1622_p11 }
 0x2b0   : > { %p1625_p7 = pnand %p1624_p5, %p1618_p13 }
 0x363   : > { %v839_v0 = vpop.f32.mrb[4].mxu0 }
 0x364   : > { %1062 = vst.msk [vmem:[%s376_s26] sm:$0xff] %vm408_vm1, %v839_v0  ;;  %v1381_v9 = vpop.f32.mrb[5].mxu0 }
 0x367   : > { %v912_v10 = vpop.f32.mrb[4].mxu1 }
 0x368   : > { %1063 = vst.msk [vmem:[%s376_s26 + $0x8] sm:$0xff] %vm408_vm1, %v912_v10  ;;  %v985_v11 = vpop.f32.mrb[6].mxu0  ;;  %v1386_v12 = vpop.f32.mrb[5].mxu1 }
 0x369   : > { %1064 = vst.msk [vmem:[%s376_s26 + $0x10] sm:$0xff] %vm408_vm1, %v985_v11  ;;  %v1391_v13 = vpop.f32.mrb[7].mxu0 }
 0x36b   : > { %v1058_v14 = vpop.f32.mrb[6].mxu1 }
 0x36c   : > { %1065 = vst.msk [vmem:[%s376_s26 + $0x18] sm:$0xff] %vm408_vm1, %v1058_v14  ;;  %v1396_v15 = vpop.f32.mrb[7].mxu1 }
 0x36d   : > { %1628 = shalt.err (!%p1625_p7)
}
 0x36e   : > { %s1629_s21 = scalar_lea.hbm %s2083_s8, 512  ;;  %s1633_s27 = scalar_lea.hbm %s2140_s4, 1024 }
 0x36f   : > { %p1630_p4 = scmp.ne.s32.totalorder %s2083_s8, %s1629_s21  ;;  %p1634_p10 = scmp.lt.u32.totalorder %s2083_s8, %s2140_s4 }
 0x370   : > { %p1635_p9 = scmp.lt.u32.totalorder %s1633_s27, %s1629_s21  ;;  %p1637_p1 = scmp.lt.u32.totalorder %s1629_s21, %s2083_s8 }
 0x371   : > { %p1631_p3 = pnand %p1630_p4, %p2175_p8 }
 0x372   : > { %p1636_p12 = por %p1635_p9, %p1634_p10 }
 0x373   : > { %p1632_p0 = pneg %p1631_p3 }
 0x374   : > { %p1638_p6 = por %p1637_p1, %p1636_p12 }
 0x376   : > { %p1639_p13 = pnand %p1638_p6, %p1632_p0 }
 0x378   : > { %1642 = shalt.err (!%p1639_p13)
}
 0x379   : > { %1403 = dma.vmem_to_hbm [thread:$0]  (%p2175_p8), %s2075_s28, 512, %s2083_s8, %s1071_s1, %s1716_s7, %s1716_s7, %s1717_s13  }
 0x37a PF: > { %s2176_s24 = sld [smem:[#allocation19_spill]]  ;;  %s2177_s30 = sld [smem:[#allocation16_spill]] }
 0x37b   : > { %s1126_s23 = sand.u32 1, %s1685_s18  }
 0x37c   : > { %s1127_s26 = scalar_lea.sflag [#allocation4], %s1126_s23 }
 0x380   : > { %p2178_p11 = scmp.ne.s32.totalorder %s2176_s24, 0  ;;  %p2179_p2 = scmp.ge.s32.totalorder %s2177_s30, 2 }
 0x382   : > { %p1418_p5 = pnand %p2179_p2, %p2178_p11 }
 0x384   : > { %1676 = dma.done.wait (!%p1418_p5), %s1127_s26, 512  }
 0x385   : > { %1678 = vsyncadd (!%p1418_p5), %s1127_s26, 4294966784  ;;  %s1136_s6 = scalar_lea.sflag [#allocation10], %s1126_s23 }
 0x386   : > { %1680 = dma.done.wait (!%p1418_p5), %s1136_s6, 512  }
 0x387   : > { %1682 = vsyncadd (!%p1418_p5), %s1136_s6, 4294966784  ;;  %s28_s23 = sadd.s32 1, %s2177_s30   ;;  %s2180_s29 = sld [smem:[#allocation18_spill]] }
 0x388   : > { %p25_p7 = scmp.ge.s32.totalorder %s28_s23, 4   ;;  %s2181_s21 = sld [smem:[#allocation15_spill]] }
 0x389   : > { %s2182_s22 = sld [smem:[#allocation17_spill]]  ;;  %s2183_s18 = smov %s1689_s19 }
 0x38a   : > { %s2184_s19 = smov %s1693_s20  ;;  %27 = sbr.rel (!%p25_p7) target bundleno = 12 (0xc), region = 125 }
 0x38d   : > { %s2185_s20 = smov %s2180_s29 }
 0x391   :  { %1141 = vsyncpa [#allocation3], 1 }
 0x392   :  { %1143 = vsyncpa [#allocation3 + $0x1], 1 }
 0x393   :  { %1144 = vsyncpa [#allocation6], 1 }
 0x394   :  { %1146 = vsyncpa [#allocation6 + $0x1], 1 }
 0x395   :  { %1147 = vsyncpa [#allocation4], 1 }
 0x396   :  { %1149 = vsyncpa [#allocation4 + $0x1], 1 }
 0x397   :  { %1150 = vsyncpa [#allocation10], 1 }
 0x398   :  { %1152 = vsyncpa [#allocation10 + $0x1], 1 }

</bundles_post_ra>
